<compile_context>
chip_gen: v7x
topology: tpu7x:2x2x1
jax: 0.10.0
libtpu: 0.0.40
codegen_flags: <defaults>
</compile_context>

<pallas_src>
import math

import jax
import jax.numpy as jnp
from jax.experimental import pallas as pl
from jax.experimental.pallas import tpu as pltpu


def _pos_embed_kernel(x_ref, pos_ref, o_ref):
    # Elementwise broadcast-add. pos_ref either matches x_ref's block shape
    # (row layout) or has a leading 1 (2-D fallback layout) and broadcasts.
    o_ref[...] = x_ref[...] + pos_ref[...]


def _sublane_align(itemsize):
    # Sub-32-bit dtypes pack along sublanes: f32 -> 8, bf16 -> 16, int8/fp8 -> 32.
    return {4: 8, 2: 16, 1: 32}.get(itemsize, 8)


_TARGET_TILE_BYTES = 2 << 20  # ~2 MiB per x tile: 85% HBM-roofline plateau.


def _choose_row_tile(rows_per_batch, batch, itemsize, target=_TARGET_TILE_BYTES):
    """Largest aligned divisor of rows_per_batch whose (tr, 128) tile fits `target`."""
    align = _sublane_align(itemsize)
    row_bytes = 128 * itemsize
    cap = max(8, min(rows_per_batch, target // row_bytes))

    def largest_divisor(step):
        start = (cap // step) * step
        for d in range(start, step - 1, -step):
            if rows_per_batch % d == 0:
                return d
        return 0

    tr = largest_divisor(align)
    if tr == 0 and align != 8:
        tr = largest_divisor(8)            # (8, 128) blocks are always legal
    if tr == 0:
        tr = rows_per_batch                # caller guarantees rows_per_batch % 8 == 0

    # v7x megacore: guarantee >= 2 grid steps to shard whenever we can split.
    if batch * (rows_per_batch // tr) < 2 and tr % 16 == 0:
        tr //= 2
    return tr


def _choose_2d_tiles(batch, feat, itemsize, target=_TARGET_TILE_BYTES):
    """Fallback (tb, tn) tiling for the (B, N) layout (N not 1024-aligned)."""
    align = _sublane_align(itemsize)

    if feat % 128 == 0:
        tn = feat
        while tn * itemsize > target and tn % 256 == 0:
            tn //= 2
    else:
        tn = feat  # full-extent block along the lane dim: always legal.

    tb = batch
    if batch * tn * itemsize > target and batch >= 2 * align:
        for d in range(batch - batch % align, align - 1, -align):
            if batch % d == 0 and d * tn * itemsize <= target:
                tb = d
                break

    # Joint-budget fix: if batch tiling alone can't bring the tile under the
    # budget, keep shrinking the lane dimension instead of blowing VMEM.
    while tb * tn * itemsize > target and tn % 256 == 0:
        tn //= 2
    return tb, tn


def positional_embedding(x, pos, *, donate_x=False):
    """out = x + pos, pos broadcast over batch.

    x:   (B, C, *spatial)
    pos: (1, C, *spatial)
    """
    assert pos.shape == (1,) + tuple(x.shape[1:]), (x.shape, pos.shape)
    assert pos.dtype == x.dtype, (x.dtype, pos.dtype)

    B = x.shape[0]
    N = math.prod(x.shape[1:])
    itemsize = jnp.dtype(x.dtype).itemsize

    if N % 1024 == 0:
        # Sublane-dense row layout: each batch element becomes R rows of 128
        # lanes; batches stacked along the row axis. Bit-exact reshapes only.
        R = N // 128                      # multiple of 8
        tr = _choose_row_tile(R, B, itemsize)
        n_feat = R // tr

        x2 = x.reshape(B * R, 128)
        pos2 = pos.reshape(R, 128)

        in_specs = [
            pl.BlockSpec((tr, 128), lambda j, b: (b * n_feat + j, 0)),  # x
            pl.BlockSpec((tr, 128), lambda j, b: (j, 0)),               # pos
        ]
        out_spec = pl.BlockSpec((tr, 128), lambda j, b: (b * n_feat + j, 0))
        grid = (n_feat, B)
        out_shape2 = jax.ShapeDtypeStruct((B * R, 128), x.dtype)
        tile_bytes = tr * 128 * itemsize
        pos_tile_bytes = tile_bytes
    else:
        # Fallback layout: (B, N) with a (possibly sublane-sparse) 2-D tile.
        tb, tn = _choose_2d_tiles(B, N, itemsize)
        n_feat = pl.cdiv(N, tn)
        n_batch = pl.cdiv(B, tb)

        x2 = x.reshape(B, N)
        pos2 = pos.reshape(1, N)

        in_specs = [
            pl.BlockSpec((tb, tn), lambda j, b: (b, j)),   # x
            pl.BlockSpec((1, tn), lambda j, b: (0, j)),    # pos (batch-broadcast)
        ]
        out_spec = pl.BlockSpec((tb, tn), lambda j, b: (b, j))
        grid = (n_feat, n_batch)
        out_shape2 = jax.ShapeDtypeStruct((B, N), x.dtype)
        tile_bytes = tb * tn * itemsize
        pos_tile_bytes = tn * itemsize

    # Double-buffered x/out/pos tiles + headroom; capped well inside v7x's
    # 64 MiB physical VMEM (v5e/v6e have 128 MiB).
    vmem_limit = int(min(max(4 * (2 * tile_bytes + pos_tile_bytes), 16 << 20),
                         48 << 20))

    cost = pl.CostEstimate(
        flops=B * N,
        transcendentals=0,
        bytes_accessed=(2 * B * N + N) * itemsize,  # read x, write out, read pos
    )

    out2 = pl.pallas_call(
        _pos_embed_kernel,
        out_shape=out_shape2,
        grid_spec=pltpu.PrefetchScalarGridSpec(
            num_scalar_prefetch=0,
            # Feature tiles outer, batch inner: the pos block index is constant
            # across consecutive (inner) steps -> its re-fetch is elided.
            grid=grid,
            in_specs=in_specs,
            out_specs=out_spec,
        ),
        compiler_params=pltpu.CompilerParams(
            # No output block is revisited, so both axes are safely "parallel"
            # (megacore-shardable on v7x; harmless on single-TC v5e/v6e).
            dimension_semantics=("parallel", "parallel"),
            vmem_limit_bytes=vmem_limit,
        ),
        cost_estimate=cost,
        input_output_aliases={0: 0} if donate_x else {},
    )(x2, pos2)

    return out2.reshape(x.shape)


if __name__ == "__main__":
    # Module config: channels=4, spatial_size=(16, 16); batch=2.
    B, C, H, W = 2, 4, 16, 16

    key = jax.random.PRNGKey(0)
    kx, kp = jax.random.split(key)

    x = jax.random.normal(kx, (B, C, H, W), dtype=jnp.float32)
    # nn.init.normal_(self.pos, std=1.0) -> deterministic synthetic init here.
    pos = jax.random.normal(kp, (1, C, H, W), dtype=jnp.float32)

    out = positional_embedding(x, pos)
    out = jax.block_until_ready(out)

    ref = x + pos
    assert out.shape == (B, C, H, W)
    assert jnp.allclose(out, ref, atol=1e-6), "mismatch vs reference (toy shape)"

    # Extra correctness check exercising multi-batch row indexing in the same
    # sublane-dense layout (still small: 16*8*16*16 f32 = 512 KiB).
    B2, C2 = 16, 8
    kx2, kp2 = jax.random.split(jax.random.PRNGKey(1))
    x_big = jax.random.normal(kx2, (B2, C2, H, W), dtype=jnp.float32)
    pos_big = jax.random.normal(kp2, (1, C2, H, W), dtype=jnp.float32)
    out_big = jax.block_until_ready(positional_embedding(x_big, pos_big))
    assert jnp.allclose(out_big, x_big + pos_big, atol=1e-6), "mismatch (multi-batch)"

    print("KERNEL_OK")
</pallas_src>

<mosaic_0001>
module attributes {stable_mosaic.version = 11 : i64} {
  func.func @_pos_embed_kernel(%arg0: i32, %arg1: i32, %arg2: memref<8x128xf32, #tpu.memory_space<vmem>>, %arg3: memref<8x128xf32, #tpu.memory_space<vmem>>, %arg4: memref<8x128xf32, #tpu.memory_space<vmem>>) attributes {dimension_semantics = [#tpu.dimension_semantics<parallel>, #tpu.dimension_semantics<parallel>], iteration_bounds = array<i64: 1, 2>, scalar_prefetch = 0 : i64, scratch_operands = 0 : i64, tpu.core_type = #tpu.core_type<tc>, window_params = [{transform_indices = @transform_0, window_bounds = array<i64: 8, 128>}, {transform_indices = @transform_1, window_bounds = array<i64: 8, 128>}, {transform_indices = @transform_2, window_bounds = array<i64: 8, 128>}]} {
    %c0 = arith.constant 0 : index
    %c0_0 = arith.constant 0 : index
    %0 = vector.load %arg2[%c0, %c0_0] : memref<8x128xf32, #tpu.memory_space<vmem>>, vector<8x128xf32>
    %c0_1 = arith.constant 0 : index
    %c0_2 = arith.constant 0 : index
    %1 = vector.load %arg3[%c0_1, %c0_2] : memref<8x128xf32, #tpu.memory_space<vmem>>, vector<8x128xf32>
    %2 = arith.addf %0, %1 : vector<8x128xf32>
    %c0_3 = arith.constant 0 : index
    %c0_4 = arith.constant 0 : index
    %3 = vector.load %arg4[%c0_3, %c0_4] : memref<8x128xf32, #tpu.memory_space<vmem>>, vector<8x128xf32>
    tpu.vector_store %arg4[%c0_3, %c0_4], %2 {strides = array<i32>} : memref<8x128xf32, #tpu.memory_space<vmem>>, vector<8x128xf32>,
    return
  }
  func.func @transform_0(%arg0: i32, %arg1: i32) -> (i32, i32) {
    %c1_i32 = arith.constant 1 : i32
    %0 = arith.muli %arg1, %c1_i32 : i32
    %1 = arith.addi %0, %arg0 : i32
    %c0_i32 = arith.constant 0 : i32
    %c0_i32_0 = arith.constant 0 : i32
    return %1, %c0_i32 : i32, i32
  }
  func.func @transform_1(%arg0: i32, %arg1: i32) -> (i32, i32) {
    %c0_i32 = arith.constant 0 : i32
    %c0_i32_0 = arith.constant 0 : i32
    return %arg0, %c0_i32 : i32, i32
  }
  func.func @transform_2(%arg0: i32, %arg1: i32) -> (i32, i32) {
    %c1_i32 = arith.constant 1 : i32
    %0 = arith.muli %arg1, %c1_i32 : i32
    %1 = arith.addi %0, %arg0 : i32
    %c0_i32 = arith.constant 0 : i32
    %c0_i32_0 = arith.constant 0 : i32
    return %1, %c0_i32 : i32, i32
  }
}

</mosaic_0001>

<bundles_post_ra>
// kernel: tpu_custom_call.1
= control target key start
LH: loop header
LB: loop body
LE: loop exit
PB: predicated region body
PF: predicated region fallthrough
CT: control target
= control target key end

     0   :  { %7 = vsyncpa [#allocation3], 0  ;;  %s777_s0 = inlined_call_operand.hbm [shape: f32[16,128], index: 0, kind: input, shape index: {}]   ;;  %s778_s1 = inlined_call_operand.hbm [shape: f32[8,128], index: 1, kind: input, shape index: {}]   ;;  %s779_s2 = inlined_call_operand.hbm [shape: f32[16,128], index: 2, kind: output, shape index: {}]  }
   0x1   :  { %9 = vsyncpa [#allocation3 + $0x1], 0 }
   0x2   :  { %10 = vsyncpa [#allocation6], 0 }
   0x3   :  { %11 = vsyncpa [#allocation4], 0 }
   0x4   :  { %13 = vsyncpa [#allocation4 + $0x1], 0  ;;  %s561_s9 = smov 0   ;;  %s563_s10 = smov 0  }
   0x5   :  { %s565_s11 = smov 0   ;;  %s567_s12 = smov 0  }
   0x6   :  { %s569_s13 = smov 0   ;;  %s571_s14 = smov 0  }
   0x7 LB: > { %s309_s15 = sadd.s32 4294967295, %s541_s14   ;;  %s310_s16 = sadd.s32 4294967294, %s541_s14   ;;  %s541_s14 = sphi %s571_s14, %s19_s14   ;;  %s537_s13 = sphi %s569_s13, %s804_s13   ;;  %s533_s12 = sphi %s567_s12, %s803_s12   ;;  %s529_s11 = sphi %s565_s11, %s802_s11   ;;  %s525_s10 = sphi %s563_s10, %s801_s10   ;;  %s521_s9 = sphi %s561_s9, %s800_s9  }
   0x8   : > { %p53_p0 = scmp.ne.s32.totalorder %s525_s10, %s521_s9  ;;  %p595_p1 = scmp.eq.s32.totalorder %s309_s15, 0 }
   0x9   : > { %p599_p2 = scmp.eq.s32.totalorder %s309_s15, 1  ;;  %p111_p3 = scmp.eq.s32.totalorder %s310_s16, 1 }
   0xa   : > { %s784_s17 = scalar_select %p595_p1, 1, 0 }
   0xb   : > { %s785_s18 = scalar_select %p599_p2, 1, 0 }
   0xc   : > { %p605_p4 = por %p595_p1, %p53_p0  ;;  %p311_p5 = scmp.ge.s32.totalorder %s541_s14, 1 }
   0xd   : > { %p610_p6 = por %p111_p3, %p53_p0  ;;  %p118_p7 = scmp.lt.s32.totalorder %s541_s14, 3 }
   0xe   : > { %s786_s19 = scalar_select %p605_p4, 1, 0 }
   0xf   : > { %s787_s20 = scalar_select %p610_p6, 1, 0 }
  0x10   : > { %p615_p8 = pnand %p311_p5, %p118_p7  ;;  %s543_s22 = smov [#allocation5]  }
  0x11   : > { %s133_s23 = sshll.u32 %s543_s22, 4  ;;  %s28_s25 = sadd.s32 1, %s537_s13  ;;  %s134_s23 = int_to_ptr.vmem [resolvable:$true] %s133_s23 }
  0x12   : > { %s788_s21 = scalar_select %p615_p8, 1, 0 }
  0x13   : > { %p332_p10 = pneg %p615_p8  ;;  %s40_s26 = sadd.s32 1, %s529_s11 }
  0x14   : > { %p630_p12 = scmp.ge.s32.totalorder %s28_s25, 2  ;;  %s397_s30 = scalar_lea.hbm %s778_s1, 128 }
  0x15   : > { %p624_p11 = pnand %p332_p10, %p595_p1  ;;  %p398_p13 = scmp.ne.s32.totalorder %s778_s1, %s397_s30 }
  0x16   : > { %s790_s27 = scalar_select %p630_p12, 1, 0 }
  0x17   : > { %p399_p0 = pneg %p624_p11  ;;  %p404_p7 = scmp.lt.u32.totalorder %s397_s30, %s778_s1 }
  0x19   : > { %p400_p3 = pnand %p399_p0, %p398_p13 }
  0x1b   : > { %p401_p5 = pneg %p400_p3 }
  0x1d   : > { %p406_p10 = pnand %p404_p7, %p401_p5 }
  0x1f   : > { %409 = shalt.err (!%p406_p10)
}
  0x20   : > { %s410_s7 = scalar_lea.vmem %s134_s23, 128  ;;  %p418_p4 = scmp.lt.s32.totalorder %s134_s23, %s134_s23 }
  0x21   : > { %p411_p9 = scmp.ne.s32.totalorder %s134_s23, %s410_s7  ;;  %p419_p8 = scmp.lt.s32.totalorder %s410_s7, %s410_s7 }
  0x23   : > { %p413_p6 = pnand %p411_p9, %p399_p0  ;;  %p420_p2 = por %p419_p8, %p418_p4 }
  0x25   : > { %p414_p1 = pneg %p413_p6 }
  0x27   : > { %p421_p12 = pnand %p420_p2, %p414_p1 }
  0x29   : > { %424 = shalt.err (!%p421_p12)
}
  0x2a   : > { %335 = dma.hbm_to_vmem [thread:$0]  (!%p624_p11), %s778_s1, 128, %s134_s23, [#allocation6]  }
  0x2b   : > { %p791_p4 = scmp.ne.s32.totalorder %s790_s27, 0  ;;  %p47_p1 = scmp.ne.s32.totalorder %s529_s11, %s525_s10 }
  0x2c   : > { %p48_p2 = scmp.eq.s32.totalorder %s541_s14, 0  ;;  %p345_p6 = scmp.lt.s32.totalorder %s541_s14, 2 }
  0x2d   : > { %s806_s25 = smov (%p791_p4, %s28_s25), 0  ;;  %p792_p12 = scmp.ne.s32.totalorder %s785_s18, 0 }
  0x2e   : > { %s37_s16 = ssub.s32 %s537_s13, %s806_s25  ;;  %p49_p9 = por %p48_p2, %p47_p1 }
  0x2f   : > { %p38_p8 = scmp.eq.s32.totalorder %s37_s16, 0  ;;  %p662_p13 = por %p792_p12, %p47_p1 }
  0x30   : > { %s144_s24 = sand.u32 1, %s529_s11   ;;  %s315_s27 = sshll.u32 %s537_s13, 7 }
  0x31   : > { %s670_s28 = scalar_select %p38_p8, %s529_s11, %s40_s26  }
  0x32   : > { %s314_s23 = sshll.u32 %s144_s24, 3  ;;  %s676_s3 = scalar_lea.hbm %s777_s0, %s315_s27 }
  0x33   : > { %s148_s18 = scalar_lea.vmem [#allocation2], %s314_s23  ;;  %p680_p11 = pnand %p345_p6, %p49_p9 }
  0x34   : > { %s156_s4 = sshll.u32 %s148_s18, 4  ;;  %s145_s26 = scalar_lea.sflag [#allocation3], %s144_s24  ;;  %s678_s4 = int_to_ptr.vmem [resolvable:$true] %s156_s4 }
  0x35   : > { %s425_s6 = scalar_lea.hbm %s676_s3, 128  ;;  %p427_p3 = pneg %p680_p11 }
  0x36   : > { %p426_p0 = scmp.ne.s32.totalorder %s676_s3, %s425_s6  ;;  %s430_s15 = scalar_lea.hbm %s777_s0, 256 }
  0x37   : > { %p431_p10 = scmp.lt.u32.totalorder %s676_s3, %s777_s0  ;;  %p432_p4 = scmp.lt.u32.totalorder %s430_s15, %s425_s6 }
  0x38   : > { %p428_p5 = pnand %p427_p3, %p426_p0  ;;  %p434_p2 = scmp.lt.u32.totalorder %s425_s6, %s676_s3 }
  0x39   : > { %p433_p1 = por %p432_p4, %p431_p10 }
  0x3a   : > { %p429_p7 = pneg %p428_p5 }
  0x3b   : > { %p435_p6 = por %p434_p2, %p433_p1 }
  0x3d   : > { %p436_p8 = pnand %p435_p6, %p429_p7 }
  0x3f   : > { %439 = shalt.err (!%p436_p8)
}
  0x40   : > { %s440_s24 = scalar_lea.vmem %s678_s4, 128  ;;  %s544_s27 = smov [#allocation2]  }
  0x41   : > { %p441_p9 = scmp.ne.s32.totalorder %s678_s4, %s440_s24  ;;  %s445_s29 = sshll.u32 %s544_s27, 4  ;;  %s446_s29 = int_to_ptr.vmem [resolvable:$false] %s445_s29 }
  0x42   : > { %s447_s30 = scalar_lea.vmem %s446_s29, 256  ;;  %p448_p5 = scmp.lt.s32.totalorder %s678_s4, %s446_s29 }
  0x43   : > { %p443_p12 = pnand %p441_p9, %p427_p3  ;;  %p449_p10 = scmp.lt.s32.totalorder %s447_s30, %s440_s24 }
  0x45   : > { %p444_p0 = pneg %p443_p12  ;;  %p450_p4 = por %p449_p10, %p448_p5 }
  0x47   : > { %p451_p1 = pnand %p450_p4, %p444_p0 }
  0x49   : > { %454 = shalt.err (!%p451_p1)
}
  0x4a   : > { %339 = dma.hbm_to_vmem [thread:$0]  (!%p680_p11), %s676_s3, 128, %s678_s4, %s145_s26  }
  0x4b   : > { %p795_p7 = scmp.ne.s32.totalorder %s788_s21, 0 }
  0x4c   : > { %s712_s18 = sand.u32 (!%p795_p7), 1, %s525_s10   ;;  %p796_p3 = scmp.ne.s32.totalorder (!%p795_p7), %s786_s19, 0 }
  0x4d   : > { %165 = sbr.rel (%p795_p7) target bundleno = 113 (0x71), region = 28  ;;  %s317_s6 = sshll.u32 (!%p795_p7), %s712_s18, 3 }
  0x4e   : > { %s168_s7 = scalar_lea.sflag (!%p795_p7), [#allocation3], %s712_s18  ;;  %s171_s8 = scalar_lea.vmem (!%p795_p7), [#allocation2], %s317_s6 }
  0x54   : > { %508 = dma.done.wait (%p796_p3), %s168_s7, 128  }
  0x55   : > { %510 = vsyncadd (%p796_p3), %s168_s7, 4294967168  ;;  %p797_p2 = scmp.ne.s32.totalorder %s784_s17, 0 }
  0x57   : > { %512 = dma.done.wait (%p797_p2), [#allocation6], 128  }
  0x58   : > { %514 = vsyncadd (%p797_p2), [#allocation6], 4294967168  ;;  %s195_s21 = scalar_lea.vmem [#allocation7], %s317_s6  ;;  %s321_s4 = sshll.u32 %s533_s12, 7  ;;  %v198_v0 = vld [vmem:[%s171_s8] sm:$0xff]  ;;  %v199_v1 = vld [vmem:[#allocation5] sm:$0xff] }
  0x59   : > { %s217_s3 = sshll.u32 %s195_s21, 4  ;;  %v200_v2 = vadd.f32 %v199_v1, %v198_v0  ;;  %s730_s26 = scalar_lea.hbm %s779_s2, %s321_s4  ;;  %s725_s3 = int_to_ptr.vmem [resolvable:$true] %s217_s3 }
  0x5a   : > { %s203_s17 = scalar_lea.sflag [#allocation4], %s712_s18  ;;  %s455_s15 = scalar_lea.vmem %s725_s3, 128 }
  0x5b   : > { %201 = vst [vmem:[%s195_s21] sm:$0xff] %v200_v2  ;;  %p456_p11 = scmp.ne.s32.totalorder %s725_s3, %s455_s15  ;;  %s545_s12 = smov [#allocation7]  }
  0x5c   : > { %s459_s16 = sshll.u32 %s545_s12, 4  ;;  %s460_s16 = int_to_ptr.vmem [resolvable:$false] %s459_s16 }
  0x5d   : > { %p457_p6 = pnand %p456_p11, %p662_p13  ;;  %s461_s23 = scalar_lea.vmem %s460_s16, 256 }
  0x5e   : > { %p462_p9 = scmp.lt.s32.totalorder %s725_s3, %s460_s16  ;;  %p463_p12 = scmp.lt.s32.totalorder %s461_s23, %s455_s15 }
  0x5f   : > { %p458_p8 = pneg %p457_p6 }
  0x60   : > { %p464_p0 = por %p463_p12, %p462_p9 }
  0x62   : > { %p465_p5 = pnand %p464_p0, %p458_p8 }
  0x64   : > { %468 = shalt.err (!%p465_p5)
}
  0x65   : > { %s469_s24 = scalar_lea.hbm %s730_s26, 128  ;;  %s473_s30 = scalar_lea.hbm %s779_s2, 256 }
  0x66   : > { %p470_p10 = scmp.ne.s32.totalorder %s730_s26, %s469_s24  ;;  %p474_p7 = scmp.lt.u32.totalorder %s730_s26, %s779_s2 }
  0x67   : > { %p475_p3 = scmp.lt.u32.totalorder %s473_s30, %s469_s24  ;;  %p477_p11 = scmp.lt.u32.totalorder %s469_s24, %s730_s26 }
  0x68   : > { %p471_p4 = pnand %p470_p10, %p662_p13 }
  0x69   : > { %p476_p2 = por %p475_p3, %p474_p7 }
  0x6a   : > { %p472_p1 = pneg %p471_p4 }
  0x6b   : > { %p478_p6 = por %p477_p11, %p476_p2 }
  0x6d   : > { %p479_p8 = pnand %p478_p6, %p472_p1 }
  0x6f   : > { %482 = shalt.err (!%p479_p8)
}
  0x70   : > { %330 = dma.vmem_to_hbm [thread:$0]  (%p662_p13), %s725_s3, 128, %s730_s26, %s203_s17  }
  0x71 PF: > { %s229_s7 = sand.u32 1, %s521_s9   ;;  %p798_p9 = scmp.ne.s32.totalorder %s787_s20, 0 }
  0x72   : > { %p799_p12 = scmp.ge.s32.totalorder %s541_s14, 2  ;;  %s230_s8 = scalar_lea.sflag [#allocation4], %s229_s7 }
  0x74   : > { %p341_p0 = pnand %p799_p12, %p798_p9 }
  0x76   : > { %516 = dma.done.wait (!%p341_p0), %s230_s8, 128  }
  0x77   : > { %518 = vsyncadd (!%p341_p0), %s230_s8, 4294967168  ;;  %s19_s14 = sadd.s32 1, %s541_s14   ;;  %s800_s9 = smov %s525_s10 }
  0x78   : > { %p16_p5 = scmp.ge.s32.totalorder %s19_s14, 4   ;;  %s801_s10 = smov %s529_s11 }
  0x79   : > { %s802_s11 = smov %s670_s28  ;;  %s803_s12 = smov %s537_s13 }
  0x7a   : > { %s804_s13 = smov %s806_s25  ;;  %18 = sbr.rel (!%p16_p5) target bundleno = 7 (0x7), region = 78 }
  0x81   :  { %235 = vsyncpa [#allocation3], 1 }
  0x82   :  { %237 = vsyncpa [#allocation3 + $0x1], 1 }
  0x83   :  { %238 = vsyncpa [#allocation6], 1 }
  0x84   :  { %239 = vsyncpa [#allocation4], 1 }
  0x85   :  { %241 = vsyncpa [#allocation4 + $0x1], 1 }

</bundles_post_ra>
